<compile_context>
chip_gen: v7x
topology: tpu7x:2x2x1
jax: 0.10.0
libtpu: 0.0.40
codegen_flags: <defaults>
</compile_context>

<pallas_src>
import functools

import jax
import jax.numpy as jnp
from jax import lax
from jax.experimental import pallas as pl
from jax.experimental.pallas import tpu as pltpu

_SUBLANES = 8
_LANES = 128
_EPS = 1e-15
_NEG_LOG_EPS = 34.538776394910684  # -log(1e-15)


def _tile_partial_sum(x):
    """(tile_rows, 128) -> (8, 128): sum whole vregs along the leading axis.

    Pure VPU adds (no cross-lane reduction); the single cross-lane reduce to a
    scalar happens once, outside the kernel.
    """
    return jnp.sum(x.reshape(-1, _SUBLANES, _LANES), axis=0)


def _wbce_kernel(est_ref, tgt_ref, out_ref, *, total, tile_rows, needs_mask):
    """One grid step: weighted-BCE on a (tile_rows, 128) tile -> (8,128) partial."""
    step = pl.program_id(0)

    x = est_ref[...].astype(jnp.float32)
    t = tgt_ref[...].astype(jnp.float32)

    # Logits-form weighted BCE, matching the reference
    #   e = clamp(sigmoid(x), 1e-15, 1-1e-15)
    #   -loss = -(t*log(e)*|1-e| + (1-t)*log(1-e)*|e|)
    # with log(e) = -softplus(-x), log(1-e) = -softplus(x), |e| = sigmoid(x),
    # |1-e| = sigmoid(-x).  One exp + one log1p + one divide per element.
    z = jnp.exp(-jnp.abs(x))                       # exp(-|x|) in (0, 1]
    lp1 = jnp.log1p(z)                             # log(1 + exp(-|x|))
    sp_pos = jnp.maximum(x, 0.0) + lp1             # softplus(x)  = -log(1 - sigmoid(x))
    sp_neg = jnp.maximum(-x, 0.0) + lp1            # softplus(-x) = -log(sigmoid(x))
    sp_pos = jnp.minimum(sp_pos, _NEG_LOG_EPS)     # reproduce the 1e-15 clamp
    sp_neg = jnp.minimum(sp_neg, _NEG_LOG_EPS)
    sig_abs = 1.0 / (1.0 + z)                      # sigmoid(|x|)
    sig_pos = jnp.where(x >= 0, sig_abs, 1.0 - sig_abs)   # sigmoid(x)  = |e|
    sig_neg = 1.0 - sig_pos                                # sigmoid(-x) = |1-e|
    w_pos = jnp.clip(sig_pos, _EPS, 1.0 - _EPS)
    w_neg = jnp.clip(sig_neg, _EPS, 1.0 - _EPS)

    # per-element value of (-loss); scalar term_weights is applied outside.
    contrib = t * (sp_neg * w_neg) + (1.0 - t) * (sp_pos * w_pos)

    if needs_mask:
        last = pl.num_programs(0) - 1

        @pl.when(step != last)
        def _():
            out_ref[...] = _tile_partial_sum(contrib)

        @pl.when(step == last)
        def _():
            # Mask out padded / out-of-bounds elements of the final tile only.
            rid = lax.broadcasted_iota(jnp.int32, (tile_rows, _LANES), 0)
            lid = lax.broadcasted_iota(jnp.int32, (tile_rows, _LANES), 1)
            gidx = (step * tile_rows + rid) * _LANES + lid
            masked = jnp.where(gidx < total, contrib, 0.0)
            out_ref[...] = _tile_partial_sum(masked)
    else:
        out_ref[...] = _tile_partial_sum(contrib)


def weighted_binary_cross_entropy_loss(estimates, target, exponents=1.0,
                                       term_weights=1.0, *, reduction="mean",
                                       tile_rows=1024):
    """Pallas TPU implementation of WeightedBinaryCrossEntropyLoss.forward.

    `exponents` is unused in the reference forward pass and is ignored here.
    Only scalar `term_weights` is supported (the reference default).
    """
    del exponents
    if reduction not in ("mean", "sum"):
        raise ValueError("Unsupported reduction method {:s}".format(reduction))

    total = int(estimates.size)
    flat_e = estimates.reshape(-1)   # native dtype, no up-cast
    flat_t = target.reshape(-1)

    # Pad only when numel is not a multiple of 128 (needed for the lane-dense
    # reshape); the padded tail is masked inside the kernel.
    padded = pl.cdiv(total, _LANES) * _LANES
    pad = padded - total
    if pad:
        flat_e = jnp.pad(flat_e, (0, pad))
        flat_t = jnp.pad(flat_t, (0, pad))

    rows = padded // _LANES
    rows_rounded = pl.cdiv(rows, _SUBLANES) * _SUBLANES
    tile_rows = min(int(tile_rows), rows_rounded)
    tile_rows = max(_SUBLANES, (tile_rows // _SUBLANES) * _SUBLANES)
    grid = pl.cdiv(rows, tile_rows)
    needs_mask = (pad > 0) or (rows % tile_rows != 0)

    e2 = flat_e.reshape(rows, _LANES)
    t2 = flat_t.reshape(rows, _LANES)

    kernel = functools.partial(_wbce_kernel, total=total,
                               tile_rows=tile_rows, needs_mask=needs_mask)

    partials = pl.pallas_call(
        kernel,
        out_shape=jax.ShapeDtypeStruct((grid * _SUBLANES, _LANES), jnp.float32),
        grid_spec=pltpu.PrefetchScalarGridSpec(
            num_scalar_prefetch=0,
            grid=(grid,),
            in_specs=[
                pl.BlockSpec((tile_rows, _LANES), lambda i: (i, 0)),   # estimates
                pl.BlockSpec((tile_rows, _LANES), lambda i: (i, 0)),   # target
            ],
            out_specs=pl.BlockSpec((_SUBLANES, _LANES), lambda i: (i, 0)),
        ),
        compiler_params=pltpu.CompilerParams(
            dimension_semantics=("parallel",)),   # no carried state -> shardable
    )(e2, t2)

    # Final tiny reduction + scalar term_weights / mean scaling.
    # TODO(synk): tensor-valued (broadcastable) term_weights would need to be
    # streamed into the kernel; only scalar term_weights is supported here.
    tw = jnp.asarray(term_weights, dtype=jnp.float32)
    scale = jnp.float32((1.0 / float(total)) if reduction == "mean" else 1.0)
    return jnp.sum(partials) * tw * scale


def _reference(estimates, target, term_weights=1.0, reduction="mean"):
    """Direct JAX transcription of the PyTorch module (for the check)."""
    e = jax.nn.sigmoid(estimates.astype(jnp.float32))
    e = jnp.clip(e, _EPS, 1.0 - _EPS)
    t = target.astype(jnp.float32)
    loss = t * jnp.log(e) * jnp.abs(1.0 - e) + (1.0 - t) * jnp.log(1.0 - e) * jnp.abs(e)
    v = -loss * term_weights
    return jnp.mean(v) if reduction == "mean" else jnp.sum(v)


if __name__ == "__main__":
    key = jax.random.PRNGKey(0)
    k1, k2, k3, k4 = jax.random.split(key, 4)

    # Case 1: typical NCHW conv-output shape (element count 128-aligned).
    est1 = jax.random.normal(k1, (2, 4, 16, 16), dtype=jnp.float32)
    tgt1 = (jax.random.uniform(k2, (2, 4, 16, 16)) > 0.5).astype(jnp.float32)
    loss1 = jax.block_until_ready(
        weighted_binary_cross_entropy_loss(est1, tgt1, reduction="mean"))
    ref1 = _reference(est1, tgt1, reduction="mean")
    assert jnp.allclose(loss1, ref1, rtol=1e-5, atol=1e-5), (loss1, ref1)

    # Case 2: multi-tile grid (exercises the "parallel" axis) + sum reduction.
    loss2 = jax.block_until_ready(
        weighted_binary_cross_entropy_loss(est1, tgt1, reduction="sum",
                                           tile_rows=8))
    ref2 = _reference(est1, tgt1, reduction="sum")
    assert jnp.allclose(loss2, ref2, rtol=2e-5, atol=1e-4), (loss2, ref2)

    # Case 3: non-128-aligned element count (exercises the in-kernel last-tile
    # mask) + scalar term_weights.
    est3 = jax.random.normal(k3, (3, 5, 7, 13), dtype=jnp.float32)
    tgt3 = (jax.random.uniform(k4, (3, 5, 7, 13)) > 0.5).astype(jnp.float32)
    loss3 = jax.block_until_ready(
        weighted_binary_cross_entropy_loss(est3, tgt3, term_weights=0.5,
                                           reduction="mean"))
    ref3 = _reference(est3, tgt3, term_weights=0.5, reduction="mean")
    assert jnp.allclose(loss3, ref3, rtol=1e-5, atol=1e-5), (loss3, ref3)

    print("KERNEL_OK")
</pallas_src>

<mosaic_0001>
module attributes {stable_mosaic.version = 11 : i64} {
  func.func @_wbce_kernel(%arg0: i32, %arg1: memref<16x128xf32, #tpu.memory_space<vmem>>, %arg2: memref<16x128xf32, #tpu.memory_space<vmem>>, %arg3: memref<8x128xf32, #tpu.memory_space<vmem>>) attributes {dimension_semantics = [#tpu.dimension_semantics<parallel>], iteration_bounds = array<i64: 1>, scalar_prefetch = 0 : i64, scratch_operands = 0 : i64, tpu.core_type = #tpu.core_type<tc>, window_params = [{transform_indices = @transform_0, window_bounds = array<i64: 16, 128>}, {transform_indices = @transform_1, window_bounds = array<i64: 16, 128>}, {transform_indices = @transform_2, window_bounds = array<i64: 8, 128>}]} {
    %c0 = arith.constant 0 : index
    %c0_0 = arith.constant 0 : index
    %0 = vector.load %arg1[%c0, %c0_0] : memref<16x128xf32, #tpu.memory_space<vmem>>, vector<16x128xf32>
    %c0_1 = arith.constant 0 : index
    %c0_2 = arith.constant 0 : index
    %1 = vector.load %arg2[%c0_1, %c0_2] : memref<16x128xf32, #tpu.memory_space<vmem>>, vector<16x128xf32>
    %2 = math.absf %0 : vector<16x128xf32>
    %cst = arith.constant 0.000000e+00 : f32
    %3 = vector.broadcast %cst : f32 to vector<16x128xf32>
    %4 = arith.subf %3, %2 : vector<16x128xf32>
    %5 = math.exp %4 : vector<16x128xf32>
    %6 = math.log1p %5 : vector<16x128xf32>
    %cst_3 = arith.constant 0.000000e+00 : f32
    %7 = vector.broadcast %cst_3 : f32 to vector<16x128xf32>
    %8 = arith.maximumf %0, %7 : vector<16x128xf32>
    %9 = arith.addf %8, %6 : vector<16x128xf32>
    %cst_4 = arith.constant 0.000000e+00 : f32
    %10 = vector.broadcast %cst_4 : f32 to vector<16x128xf32>
    %11 = arith.subf %10, %0 : vector<16x128xf32>
    %cst_5 = arith.constant 0.000000e+00 : f32
    %12 = vector.broadcast %cst_5 : f32 to vector<16x128xf32>
    %13 = arith.maximumf %11, %12 : vector<16x128xf32>
    %14 = arith.addf %13, %6 : vector<16x128xf32>
    %cst_6 = arith.constant 34.5387764 : f32
    %15 = vector.broadcast %cst_6 : f32 to vector<16x128xf32>
    %16 = arith.minimumf %9, %15 : vector<16x128xf32>
    %cst_7 = arith.constant 34.5387764 : f32
    %17 = vector.broadcast %cst_7 : f32 to vector<16x128xf32>
    %18 = arith.minimumf %14, %17 : vector<16x128xf32>
    %cst_8 = arith.constant 1.000000e+00 : f32
    %19 = vector.broadcast %cst_8 : f32 to vector<16x128xf32>
    %20 = arith.addf %19, %5 : vector<16x128xf32>
    %cst_9 = arith.constant 1.000000e+00 : f32
    %21 = vector.broadcast %cst_9 : f32 to vector<16x128xf32>
    %22 = arith.divf %21, %20 : vector<16x128xf32>
    %cst_10 = arith.constant 0.000000e+00 : f32
    %23 = vector.broadcast %cst_10 : f32 to vector<16x128xf32>
    %24 = arith.cmpf oge, %0, %23 : vector<16x128xf32>
    %cst_11 = arith.constant 1.000000e+00 : f32
    %25 = vector.broadcast %cst_11 : f32 to vector<16x128xf32>
    %26 = arith.subf %25, %22 : vector<16x128xf32>
    %27 = arith.select %24, %22, %26 : vector<16x128xi1>, vector<16x128xf32>
    %cst_12 = arith.constant 1.000000e+00 : f32
    %28 = vector.broadcast %cst_12 : f32 to vector<16x128xf32>
    %29 = arith.subf %28, %27 : vector<16x128xf32>
    %cst_13 = arith.constant 1.000000e-15 : f32
    %cst_14 = arith.constant 1.000000e+00 : f32
    %30 = vector.broadcast %cst_13 : f32 to vector<16x128xf32>
    %31 = arith.maximumf %30, %27 : vector<16x128xf32>
    %32 = vector.broadcast %cst_14 : f32 to vector<16x128xf32>
    %33 = arith.minimumf %32, %31 : vector<16x128xf32>
    %cst_15 = arith.constant 1.000000e-15 : f32
    %cst_16 = arith.constant 1.000000e+00 : f32
    %34 = vector.broadcast %cst_15 : f32 to vector<16x128xf32>
    %35 = arith.maximumf %34, %29 : vector<16x128xf32>
    %36 = vector.broadcast %cst_16 : f32 to vector<16x128xf32>
    %37 = arith.minimumf %36, %35 : vector<16x128xf32>
    %38 = arith.mulf %18, %37 : vector<16x128xf32>
    %39 = arith.mulf %1, %38 : vector<16x128xf32>
    %cst_17 = arith.constant 1.000000e+00 : f32
    %40 = vector.broadcast %cst_17 : f32 to vector<16x128xf32>
    %41 = arith.subf %40, %1 : vector<16x128xf32>
    %42 = arith.mulf %16, %33 : vector<16x128xf32>
    %43 = arith.mulf %41, %42 : vector<16x128xf32>
    %44 = arith.addf %39, %43 : vector<16x128xf32>
    %45 = vector.shape_cast %44 : vector<16x128xf32> to vector<2x8x128xf32>
    %cst_18 = arith.constant dense<0.000000e+00> : vector<8x128xf32>
    %46 = vector.multi_reduction <add>, %45, %cst_18 [0] : vector<2x8x128xf32> to vector<8x128xf32>
    %c0_19 = arith.constant 0 : index
    %c0_20 = arith.constant 0 : index
    %47 = vector.load %arg3[%c0_19, %c0_20] : memref<8x128xf32, #tpu.memory_space<vmem>>, vector<8x128xf32>
    tpu.vector_store %arg3[%c0_19, %c0_20], %46 {strides = array<i32>} : memref<8x128xf32, #tpu.memory_space<vmem>>, vector<8x128xf32>,
    return
  }
  func.func @transform_0(%arg0: i32) -> (i32, i32) {
    %c0_i32 = arith.constant 0 : i32
    %c0_i32_0 = arith.constant 0 : i32
    return %arg0, %c0_i32 : i32, i32
  }
  func.func @transform_1(%arg0: i32) -> (i32, i32) {
    %c0_i32 = arith.constant 0 : i32
    %c0_i32_0 = arith.constant 0 : i32
    return %arg0, %c0_i32 : i32, i32
  }
  func.func @transform_2(%arg0: i32) -> (i32, i32) {
    %c0_i32 = arith.constant 0 : i32
    %c0_i32_0 = arith.constant 0 : i32
    return %arg0, %c0_i32 : i32, i32
  }
}

</mosaic_0001>

<bundles_post_ra>
// kernel: tpu_custom_call.1
= control target key start
LH: loop header
LB: loop body
LE: loop exit
PB: predicated region body
PF: predicated region fallthrough
CT: control target
= control target key end

     0   :  { %7 = vsyncpa [#allocation3], 0  ;;  %s281_s0 = inlined_call_operand.hbm [shape: f32[16,128], index: 0, kind: input, shape index: {}]   ;;  %s282_s1 = inlined_call_operand.hbm [shape: f32[16,128], index: 1, kind: input, shape index: {}]   ;;  %s283_s2 = inlined_call_operand.hbm [shape: f32[8,128], index: 2, kind: output, shape index: {}]  }
   0x1   :  { %8 = vsyncpa [#allocation6], 0 }
   0x2   :  { %9 = vsyncpa [#allocation4], 0  ;;  %s225_s9 = smov [#allocation2]   ;;  %s153_s13 = scalar_lea.hbm %s281_s0, 256 }
   0x3   :  { %s15_s10 = sshll.u32 %s225_s9, 4  ;;  %p154_p0 = scmp.ne.s32.totalorder %s281_s0, %s153_s13  ;;  %s16_s10 = int_to_ptr.vmem [resolvable:$true] %s15_s10 }
   0x4   :  { %p157_p1 = scmp.lt.u32.totalorder %s153_s13, %s281_s0 }
   0x6   :  { %p159_p2 = pnand %p157_p1, %p154_p0 }
   0x8   :  { %162 = shalt.err (!%p159_p2)
}
   0x9   :  { %s163_s18 = scalar_lea.vmem %s16_s10, 256  ;;  %p168_p4 = scmp.lt.s32.totalorder %s16_s10, %s16_s10 }
   0xa   :  { %p164_p3 = scmp.ne.s32.totalorder %s16_s10, %s163_s18  ;;  %p169_p5 = scmp.lt.s32.totalorder %s163_s18, %s163_s18 }
   0xc   :  { %p170_p6 = por %p169_p5, %p168_p4 }
   0xe   :  { %p171_p7 = pnand %p170_p6, %p164_p3 }
  0x10   :  { %174 = shalt.err (!%p171_p7)
}
  0x11   :  { %s226_s19 = smov 128   ;;  %s227_s20 = smov 8  }
  0x12   :  { %21 = dma.hbm_to_vmem [thread:$0]  %s281_s0, 256, %s16_s10, [#allocation3], %s226_s19, %s226_s19, %s227_s20  }
  0x13   :  { %s228_s23 = smov [#allocation5]   ;;  %s175_s27 = scalar_lea.hbm %s282_s1, 256 }
  0x14   :  { %s27_s24 = sshll.u32 %s228_s23, 4  ;;  %p176_p8 = scmp.ne.s32.totalorder %s282_s1, %s175_s27  ;;  %s28_s24 = int_to_ptr.vmem [resolvable:$true] %s27_s24 }
  0x15   :  { %p179_p9 = scmp.lt.u32.totalorder %s175_s27, %s282_s1 }
  0x17   :  { %p181_p10 = pnand %p179_p9, %p176_p8 }
  0x19   :  { %184 = shalt.err (!%p181_p10)
}
  0x1a   :  { %s185_s4 = scalar_lea.vmem %s28_s24, 256  ;;  %p190_p12 = scmp.lt.s32.totalorder %s28_s24, %s28_s24 }
  0x1b   :  { %p186_p11 = scmp.ne.s32.totalorder %s28_s24, %s185_s4  ;;  %p191_p13 = scmp.lt.s32.totalorder %s185_s4, %s185_s4 }
  0x1d   :  { %p192_p0 = por %p191_p13, %p190_p12 }
  0x1f   :  { %p193_p1 = pnand %p192_p0, %p186_p11 }
  0x21   :  { %196 = shalt.err (!%p193_p1)
}
  0x22   :  { %33 = dma.hbm_to_vmem [thread:$0]  %s282_s1, 256, %s28_s24, [#allocation6], %s226_s19, %s226_s19, %s227_s20  }
  0x23   :  { %219 = dma.done.wait [#allocation3], 256  }
  0x24   :  { %220 = vsyncadd [#allocation3], 4294967040 }
  0x25   :  { %221 = dma.done.wait [#allocation6], 256  }
  0x26   :  { %222 = vsyncadd [#allocation6], 4294967040  ;;  %v40_v0 = vld [vmem:[#allocation2] sm:$0xff]  ;;  %v41_v1 = vld [vmem:[#allocation2 + $0x8] sm:$0xff]  ;;  %s229_s1 = smov [#allocation7]  }
  0x27   :  { %v44_v2 = vand.u32 2147483647, %v40_v0  ;;  %v45_v3 = vand.u32 2147483647, %v41_v1  ;;  %v74_v17 = vsub.f32 0.0, %v40_v0  ;;  %v75_v19 = vsub.f32 0.0, %v41_v1 }
  0x28   :  { %v70_v23 = vmax.f32 %v40_v0, 0.0  ;;  %v71_v27 = vmax.f32 %v41_v1, 0.0  ;;  %vm90_vm2 = vcmp.ge.f32.partialorder %v40_v0, 0.0  ;;  %vm91_vm3 = vcmp.ge.f32.partialorder %v41_v1, 0.0  ;;  %v42_v41 = vld [vmem:[#allocation5] sm:$0xff]  ;;  %v43_v45 = vld [vmem:[#allocation5 + $0x8] sm:$0xff] }
  0x29   :  { %v46_v4 = vsub.f32 0.0, %v44_v2  ;;  %v47_v5 = vsub.f32 0.0, %v45_v3  ;;  %v76_v24 = vmax.f32 %v74_v17, 0.0  ;;  %v77_v28 = vmax.f32 %v75_v19, 0.0  ;;  %s126_s6 = sshll.u32 %s229_s1, 4  ;;  %s127_s6 = int_to_ptr.vmem [resolvable:$true] %s126_s6 }
  0x2a   :  { %v110_v54 = vsub.f32 1.0, %v42_v41  ;;  %v111_v58 = vsub.f32 1.0, %v43_v45  ;;  %s197_s7 = scalar_lea.vmem %s127_s6, 128  ;;  %p202_p3 = scmp.lt.s32.totalorder %s127_s6, %s127_s6 }
  0x2b   :  { %v48_v6 = vmul.f32 1.442695, %v46_v4  ;;  %v50_v7 = vmul.f32 1.442695, %v47_v5  ;;  %p198_p2 = scmp.ne.s32.totalorder %s127_s6, %s197_s7  ;;  %p203_p4 = scmp.lt.s32.totalorder %s197_s7, %s197_s7 }
  0x2d   :  { %141 = vpow2.f32 %v48_v6  ;;  %p204_p5 = por %p203_p4, %p202_p3 }
  0x2e   :  { %143 = vpow2.f32 %v50_v7 }
  0x2f   :  { %p205_p6 = pnand %p204_p5, %p198_p2 }
  0x37   :  { %v142_v8 = vpop.eup %141 }
  0x38   :  { %v144_v9 = vpop.eup %143  ;;  %v52_v10 = vadd.f32 1.0, %v142_v8  ;;  %v55_v12 = vmul.f32 -0.5, %v142_v8  ;;  %v58_v15 = vand.u32 2147483647, %v142_v8 }
  0x39   :  { %v61_v11 = vadd.f32 1.0, %v144_v9  ;;  %v64_v13 = vmul.f32 -0.5, %v144_v9  ;;  %v67_v18 = vand.u32 2147483647, %v144_v9 }
  0x3a   :  { %145 = vlog2.f32 %v52_v10  ;;  %v56_v14 = vadd.f32 1.0, %v55_v12  ;;  %vm59_vm0 = vcmp.lt.f32.partialorder %v58_v15, 0.0004427343 }
  0x3b   :  { %147 = vlog2.f32 %v61_v11  ;;  %v65_v16 = vadd.f32 1.0, %v64_v13  ;;  %vm68_vm1 = vcmp.lt.f32.partialorder %v67_v18, 0.0004427343 }
  0x3c   :  { %149 = vrcp.f32 %v52_v10  ;;  %v57_v20 = vmul.f32 %v142_v8, %v56_v14 }
  0x3d   :  { %151 = vrcp.f32 %v61_v11  ;;  %v66_v22 = vmul.f32 %v144_v9, %v65_v16 }
  0x44   :  { %v146_v21 = vpop.eup %145 }
  0x45   :  { %v148_v25 = vpop.eup %147  ;;  %v54_v26 = vmul.f32 0.6931472, %v146_v21 }
  0x46   :  { %v150_v29 = vpop.eup %149  ;;  %v63_v30 = vmul.f32 0.6931472, %v148_v25 }
  0x47   :  { %v152_v31 = vpop.eup %151  ;;  %v60_v32 = vsel %vm59_vm0, %v57_v20, %v54_v26  ;;  %v92_v33 = vsub.f32 1.0, %v150_v29 }
  0x48   :  { %v69_v34 = vsel %vm68_vm1, %v66_v22, %v63_v30  ;;  %v72_v35 = vadd.f32 %v70_v23, %v60_v32  ;;  %v78_v36 = vadd.f32 %v76_v24, %v60_v32  ;;  %v93_v37 = vsub.f32 1.0, %v152_v31 }
  0x49   :  { %v73_v38 = vadd.f32 %v71_v27, %v69_v34  ;;  %v79_v39 = vadd.f32 %v77_v28, %v69_v34  ;;  %v94_v40 = vsel %vm90_vm2, %v150_v29, %v92_v33 }
  0x4a   :  { %v80_v42 = vmin.f32 %v72_v35, 34.538776  ;;  %v95_v43 = vsel %vm91_vm3, %v152_v31, %v93_v37  ;;  %v96_v44 = vsub.f32 1.0, %v94_v40  ;;  %v82_v47 = vmin.f32 %v78_v36, 34.538776 }
  0x4b   :  { %v81_v46 = vmin.f32 %v73_v38, 34.538776  ;;  %v97_v48 = vsub.f32 1.0, %v95_v43  ;;  %v98_v49 = vmax.f32 %v94_v40, 1e-15 }
  0x4c   :  { %v99_v50 = vmax.f32 %v95_v43, 1e-15  ;;  %v102_v51 = vmax.f32 %v96_v44, 1e-15  ;;  %v83_v52 = vmin.f32 %v79_v39, 34.538776 }
  0x4d   :  { %v103_v53 = vmax.f32 %v97_v48, 1e-15  ;;  %v100_v55 = vmin.f32 %v98_v49, 1.0 }
  0x4e   :  { %v101_v56 = vmin.f32 %v99_v50, 1.0  ;;  %v104_v57 = vmin.f32 %v102_v51, 1.0 }
  0x4f   :  { %v105_v59 = vmin.f32 %v103_v53, 1.0  ;;  %v112_v61 = vmul.f32 %v100_v55, %v80_v42 }
  0x50   :  { %v106_v60 = vmul.f32 %v104_v57, %v82_v47  ;;  %v113_v62 = vmul.f32 %v101_v56, %v81_v46 }
  0x51   :  { %v107_v63 = vmul.f32 %v105_v59, %v83_v52  ;;  %v114_v1 = vmul.f32 %v112_v61, %v110_v54 }
  0x52   :  { %v108_v0 = vmul.f32 %v106_v60, %v42_v41  ;;  %v115_v2 = vmul.f32 %v113_v62, %v111_v58 }
  0x53   :  { %v109_v3 = vmul.f32 %v107_v63, %v43_v45 }
  0x54   :  { %v116_v4 = vadd.f32 %v114_v1, %v108_v0 }
  0x55   :  { %v117_v5 = vadd.f32 %v115_v2, %v109_v3 }
  0x57   :  { %v118_v6 = vadd.f32 %v117_v5, %v116_v4 }
  0x59   :  { %119 = vst [vmem:[#allocation7] sm:$0xff] %v118_v6 }
  0x5a   :  { %208 = shalt.err (!%p205_p6)
}
  0x5b   :  { %s209_s10 = scalar_lea.hbm %s283_s2, 128 }
  0x5c   :  { %p210_p7 = scmp.ne.s32.totalorder %s283_s2, %s209_s10  ;;  %p213_p8 = scmp.lt.u32.totalorder %s209_s10, %s283_s2 }
  0x5e   :  { %p215_p9 = pnand %p213_p8, %p210_p7 }
  0x60   :  { %218 = shalt.err (!%p215_p9)
}
  0x61   :  { %129 = dma.vmem_to_hbm [thread:$0]  %s127_s6, 128, %s283_s2, [#allocation4]  }
  0x62   :  { %223 = dma.done.wait [#allocation4], 128  }
  0x63   :  { %224 = vsyncadd [#allocation4], 4294967168 }
  0x64   :  { %133 = vsyncpa [#allocation3], 1 }
  0x65   :  { %134 = vsyncpa [#allocation6], 1 }
  0x66   :  { %135 = vsyncpa [#allocation4], 1 }

</bundles_post_ra>
